<compile_context>
chip_gen: v5e
topology: v5e:2x2
jax: 0.10.0
libtpu: 0.0.40
codegen_flags: <defaults>
</compile_context>

<pallas_src>
import math
import functools

import jax
import jax.numpy as jnp
from jax.experimental import pallas as pl
from jax.experimental.pallas import tpu as pltpu


# ----------------------------------------------------------------------------
# Fused kernel: one (batch item, layer) step per grid point.
# The output block (S, D) is the carried activation across the layer axis.
# ----------------------------------------------------------------------------
def fused_encoder_kernel(x0_ref, bias_ref,
                         wqkv_ref, bqkv_ref, wo_ref, bo_ref,
                         ln1g_ref, ln1b_ref,
                         w1_ref, b1_ref, w2_ref, b2_ref,
                         ln2g_ref, ln2b_ref,
                         out_ref,
                         *, n_head):
    layer = pl.program_id(1)

    # layer 0: seed the resident output block with emb*sqrt(D)+PE (precomputed
    # in the wrapper; x0 is only read here).
    @pl.when(layer == 0)
    def _():
        out_ref[...] = x0_ref[...]

    x = out_ref[...]                       # (S, D) f32, resident across layers
    S, D = x.shape
    H = n_head
    dk = D // H

    def layer_norm(y, g, b):
        mu = jnp.mean(y, axis=-1, keepdims=True)
        d = y - mu
        var = jnp.mean(d * d, axis=-1, keepdims=True)
        return d * jax.lax.rsqrt(var + 1e-5) * g + b

    # ---- fused QKV projection: one (S, D) @ (D, 3D) matmul, bf16 in / f32 acc.
    # 1/sqrt(dk) is already folded into the Wq columns at init.
    xb = x.astype(jnp.bfloat16)
    qkv = jnp.dot(xb, wqkv_ref[0], preferred_element_type=jnp.float32) + bqkv_ref[0]

    # Head split via contiguous, head-major static column slices -> (H, S, dk).
    # (With H=4 this is 12 cheap static slices; for large H replace with a
    #  single head-major relayout.)
    def heads(col0):
        return jnp.concatenate(
            [qkv[:, col0 + h * dk: col0 + (h + 1) * dk].reshape(1, S, dk)
             for h in range(H)], axis=0)

    qh = heads(0).astype(jnp.bfloat16)
    kh = heads(D).astype(jnp.bfloat16)
    vh = heads(2 * D).astype(jnp.bfloat16)

    # ---- batched-over-heads attention (no explicit transpose).
    # TODO(synk): for realistic S (>=512) restructure as a KV-tiled online-softmax
    # (flash) loop so the (H,S,S) score block stays bounded under v7x's 64 MiB VMEM.
    s = jnp.einsum('hqd,hkd->hqk', qh, kh,
                   preferred_element_type=jnp.float32)         # (H, S, S)
    s = s + bias_ref[...]                                       # (1,1,S) key-pad bias, bcast over heads
    s = s - jnp.max(s, axis=-1, keepdims=True)
    p = jnp.exp(s)
    p = p * pl.reciprocal(jnp.sum(p, axis=-1, keepdims=True), approx=False)
    o = jnp.einsum('hqk,hkd->hqd', p.astype(jnp.bfloat16), vh,
                   preferred_element_type=jnp.float32)          # (H, S, dk)

    # ---- output projection: concat heads along features -> ONE (S,D)@(D,D) matmul
    o_cat = jnp.concatenate([o[h] for h in range(H)], axis=-1).astype(jnp.bfloat16)
    attn = jnp.dot(o_cat, wo_ref[0], preferred_element_type=jnp.float32) + bo_ref[0]

    x1 = layer_norm(x + attn, ln1g_ref[0], ln1b_ref[0])

    # ---- position-wise feed forward (bf16 matmuls, f32 accumulation)
    # TODO(synk): tile over d_ff (extra "arbitrary" grid axis / emit_pipeline) for
    # realistic d_model/d_ff so double-buffered W1/W2 fit v7x's 64 MiB VMEM.
    h1 = jnp.dot(x1.astype(jnp.bfloat16), w1_ref[0],
                 preferred_element_type=jnp.float32) + b1_ref[0]
    h1 = jnp.maximum(h1, 0.0)
    ff = jnp.dot(h1.astype(jnp.bfloat16), w2_ref[0],
                 preferred_element_type=jnp.float32) + b2_ref[0]

    out_ref[...] = layer_norm(x1 + ff, ln2g_ref[0], ln2b_ref[0])


# ----------------------------------------------------------------------------
# Wrapper (pallas_call plumbing + plain-JAX glue)
# ----------------------------------------------------------------------------
def transformer_encoder_forward(tokens, params, *, n_head, pad_token_id):
    B, S = tokens.shape
    D = params["embedding"].shape[1]
    L = params["wqkv"].shape[0]
    d_ff = params["w1"].shape[-1]
    H = n_head

    # Glue JAX (XLA-fused): embedding gather (data-dependent lookup), scale,
    # positional encoding, additive key-padding bias.
    # TODO(synk): dropout layers are identity here (inference mode, no RNG state).
    emb = jnp.take(params["embedding"], tokens.reshape(-1), axis=0)       # (B*S, D)
    pe_rows = jnp.tile(params["pe"][:S], (B, 1))                          # (B*S, D)
    x0 = emb * math.sqrt(D) + pe_rows                                     # (B*S, D)
    bias = jnp.where(tokens != pad_token_id, 0.0, -1e9).astype(jnp.float32)
    bias = bias.reshape(B, 1, S)                                          # once per batch item

    def wspec(shape):   # per-layer stacked weight: one layer block per grid step
        nd = len(shape)
        return pl.BlockSpec((1,) + tuple(shape[1:]),
                            lambda b, l, nd=nd: (l,) + (0,) * (nd - 1))

    # Size scoped VMEM to the real working set (double-buffered weight streams +
    # resident activation blocks + f32 intermediates), with headroom.
    weight_keys = ("wqkv", "bqkv", "wo", "bo", "ln1_g", "ln1_b",
                   "w1", "b1", "w2", "b2", "ln2_g", "ln2_b")
    per_layer_w_bytes = sum(math.prod(params[k].shape[1:]) * params[k].dtype.itemsize
                            for k in weight_keys)
    f32 = 4
    interm_bytes = (S * 3 * D            # qkv
                    + 6 * S * D          # heads / concat / residuals
                    + 3 * H * S * S      # scores / probs
                    + 2 * S * d_ff) * f32
    resident_bytes = 2 * (2 * S * D * f32 + S * f32)   # double-buffered x0/out/bias
    vmem_limit = int(min(60 * 2**20,
                         max(16 * 2**20,
                             2 * (2 * per_layer_w_bytes + resident_bytes + interm_bytes))))

    kernel = functools.partial(fused_encoder_kernel, n_head=n_head)

    out = pl.pallas_call(
        kernel,
        out_shape=jax.ShapeDtypeStruct((B * S, D), jnp.float32),
        grid=(B, L),
        in_specs=[
            pl.BlockSpec((S, D), lambda b, l: (b, 0)),         # x0 (read at layer 0 only)
            pl.BlockSpec((1, 1, S), lambda b, l: (b, 0, 0)),   # key-pad bias (per batch item)
            wspec(params["wqkv"].shape), wspec(params["bqkv"].shape),
            wspec(params["wo"].shape),   wspec(params["bo"].shape),
            wspec(params["ln1_g"].shape), wspec(params["ln1_b"].shape),
            wspec(params["w1"].shape),   wspec(params["b1"].shape),
            wspec(params["w2"].shape),   wspec(params["b2"].shape),
            wspec(params["ln2_g"].shape), wspec(params["ln2_b"].shape),
        ],
        out_specs=pl.BlockSpec((S, D), lambda b, l: (b, 0)),   # carried activation
        compiler_params=pltpu.CompilerParams(
            dimension_semantics=("parallel", "arbitrary"),
            vmem_limit_bytes=vmem_limit),
    )(x0, bias,
      params["wqkv"], params["bqkv"], params["wo"], params["bo"],
      params["ln1_g"], params["ln1_b"],
      params["w1"], params["b1"], params["w2"], params["b2"],
      params["ln2_g"], params["ln2_b"])

    # (B*S, D) row-major == torch's (B, S, D) flat buffer, so this reshape
    # reproduces torch's x.reshape(x.shape[1], -1) exactly.
    return out.reshape(S, B * D)


# ----------------------------------------------------------------------------
# Deterministic parameter init (synthetic weights, kernel-friendly layout)
# ----------------------------------------------------------------------------
def init_params(key, vocab_size, d_model, n_head, num_layers, d_ff, max_seq_length):
    keys = jax.random.split(key, 1 + num_layers)
    embedding = jax.random.normal(keys[0], (vocab_size, d_model), jnp.float32)

    # standard sinusoidal positional encoding
    pos = jnp.arange(max_seq_length, dtype=jnp.float32)[:, None]
    div = jnp.exp(jnp.arange(0, d_model, 2, dtype=jnp.float32)
                  * (-math.log(10000.0) / d_model))
    pe = jnp.zeros((max_seq_length, d_model), jnp.float32)
    pe = pe.at[:, 0::2].set(jnp.sin(pos * div))
    pe = pe.at[:, 1::2].set(jnp.cos(pos * div))

    def lin(k, fin, fout):
        bound = 1.0 / math.sqrt(fin)
        return jax.random.uniform(k, (fin, fout), jnp.float32, -bound, bound)

    dk = d_model // n_head
    inv_sqrt_dk = 1.0 / math.sqrt(dk)
    wqkv, wo, w1, w2 = [], [], [], []
    for li in range(num_layers):
        lk = jax.random.split(keys[1 + li], 6)
        wq = lin(lk[0], d_model, d_model) * inv_sqrt_dk   # fold 1/sqrt(dk) into Wq
        wk = lin(lk[1], d_model, d_model)
        wv = lin(lk[2], d_model, d_model)
        wqkv.append(jnp.concatenate([wq, wk, wv], axis=1))   # (D, 3D), head-contiguous cols
        wo.append(lin(lk[3], d_model, d_model))               # (D, D)
        w1.append(lin(lk[4], d_model, d_ff))
        w2.append(lin(lk[5], d_ff, d_model))

    L = num_layers
    # TODO(synk): on v5e/v6e, int8 weight storage (native int8 MXU) would halve the
    # per-layer weight DMA again; keep bf16 on v7x (no integer MXU, fp8 instead).
    return {
        "embedding": embedding,
        "pe": pe,
        # matmul weights in bf16 (half the DMA bytes / VMEM; f32 MXU accumulation)
        "wqkv": jnp.stack(wqkv).astype(jnp.bfloat16),          # (L, D, 3D)
        "wo":   jnp.stack(wo).astype(jnp.bfloat16),            # (L, D, D)
        "w1":   jnp.stack(w1).astype(jnp.bfloat16),            # (L, D, d_ff)
        "w2":   jnp.stack(w2).astype(jnp.bfloat16),            # (L, d_ff, D)
        # small params stay f32
        "bqkv": jnp.zeros((L, 1, 3 * d_model), jnp.float32),
        "bo":   jnp.zeros((L, 1, d_model), jnp.float32),
        "b1":   jnp.zeros((L, 1, d_ff), jnp.float32),
        "b2":   jnp.zeros((L, 1, d_model), jnp.float32),
        "ln1_g": jnp.ones((L, 1, d_model), jnp.float32),
        "ln1_b": jnp.zeros((L, 1, d_model), jnp.float32),
        "ln2_g": jnp.ones((L, 1, d_model), jnp.float32),
        "ln2_b": jnp.zeros((L, 1, d_model), jnp.float32),
    }


# ----------------------------------------------------------------------------
if __name__ == "__main__":
    vocab_size, d_model, n_head, num_layers, d_ff, max_seq_length = 100, 32, 4, 2, 64, 16
    pad_token_id = 0
    B, S = 2, 8

    key = jax.random.PRNGKey(0)
    pkey, tkey = jax.random.split(key)
    params = init_params(pkey, vocab_size, d_model, n_head, num_layers, d_ff,
                         max_seq_length)

    tokens = jax.random.randint(tkey, (B, S), 1, vocab_size, dtype=jnp.int32)
    tokens = tokens.at[1, 6:].set(pad_token_id)     # include some padding

    fwd = jax.jit(functools.partial(transformer_encoder_forward,
                                    n_head=n_head, pad_token_id=pad_token_id))
    out = fwd(tokens, params)
    out = jax.block_until_ready(out)
    assert out.shape == (S, B * d_model), out.shape
    assert bool(jnp.all(jnp.isfinite(out)))
    print("KERNEL_OK")
</pallas_src>

<mosaic_0001>
module attributes {stable_mosaic.version = 11 : i64} {
  func.func @fused_encoder_kernel(%arg0: i32, %arg1: i32, %arg2: memref<8x32xf32, #tpu.memory_space<vmem>>, %arg3: memref<1x1x8xf32, #tpu.memory_space<vmem>>, %arg4: memref<1x32x96xbf16, #tpu.memory_space<vmem>>, %arg5: memref<1x1x96xf32, #tpu.memory_space<vmem>>, %arg6: memref<1x32x32xbf16, #tpu.memory_space<vmem>>, %arg7: memref<1x1x32xf32, #tpu.memory_space<vmem>>, %arg8: memref<1x1x32xf32, #tpu.memory_space<vmem>>, %arg9: memref<1x1x32xf32, #tpu.memory_space<vmem>>, %arg10: memref<1x32x64xbf16, #tpu.memory_space<vmem>>, %arg11: memref<1x1x64xf32, #tpu.memory_space<vmem>>, %arg12: memref<1x64x32xbf16, #tpu.memory_space<vmem>>, %arg13: memref<1x1x32xf32, #tpu.memory_space<vmem>>, %arg14: memref<1x1x32xf32, #tpu.memory_space<vmem>>, %arg15: memref<1x1x32xf32, #tpu.memory_space<vmem>>, %arg16: memref<8x32xf32, #tpu.memory_space<vmem>>) attributes {dimension_semantics = [#tpu.dimension_semantics<parallel>, #tpu.dimension_semantics<arbitrary>], iteration_bounds = array<i64: 2, 2>, scalar_prefetch = 0 : i64, scratch_operands = 0 : i64, tpu.core_type = #tpu.core_type<tc>, window_params = [{transform_indices = @transform_0, window_bounds = array<i64: 8, 32>}, {transform_indices = @transform_1, window_bounds = array<i64: 1, 1, 8>}, {transform_indices = @transform_2, window_bounds = array<i64: 1, 32, 96>}, {transform_indices = @transform_3, window_bounds = array<i64: 1, 1, 96>}, {transform_indices = @transform_4, window_bounds = array<i64: 1, 32, 32>}, {transform_indices = @transform_5, window_bounds = array<i64: 1, 1, 32>}, {transform_indices = @transform_6, window_bounds = array<i64: 1, 1, 32>}, {transform_indices = @transform_7, window_bounds = array<i64: 1, 1, 32>}, {transform_indices = @transform_8, window_bounds = array<i64: 1, 32, 64>}, {transform_indices = @transform_9, window_bounds = array<i64: 1, 1, 64>}, {transform_indices = @transform_10, window_bounds = array<i64: 1, 64, 32>}, {transform_indices = @transform_11, window_bounds = array<i64: 1, 1, 32>}, {transform_indices = @transform_12, window_bounds = array<i64: 1, 1, 32>}, {transform_indices = @transform_13, window_bounds = array<i64: 1, 1, 32>}, {transform_indices = @transform_14, window_bounds = array<i64: 8, 32>}]} {
    %c0_i32 = arith.constant 0 : i32
    %0 = arith.cmpi eq, %arg1, %c0_i32 : i32
    %1 = arith.extui %0 : i1 to i32
    %c0_i32_0 = arith.constant 0 : i32
    %2 = arith.cmpi ne, %1, %c0_i32_0 : i32
    scf.if %2 {
      %c0_61 = arith.constant 0 : index
      %c0_62 = arith.constant 0 : index
      %144 = vector.load %arg2[%c0_61, %c0_62] : memref<8x32xf32, #tpu.memory_space<vmem>>, vector<8x32xf32>
      %c0_63 = arith.constant 0 : index
      %c0_64 = arith.constant 0 : index
      %145 = vector.load %arg16[%c0_63, %c0_64] : memref<8x32xf32, #tpu.memory_space<vmem>>, vector<8x32xf32>
      tpu.vector_store %arg16[%c0_63, %c0_64], %144 {strides = array<i32>} : memref<8x32xf32, #tpu.memory_space<vmem>>, vector<8x32xf32>,
    } else {
    }
    %c0 = arith.constant 0 : index
    %c0_1 = arith.constant 0 : index
    %3 = vector.load %arg16[%c0, %c0_1] : memref<8x32xf32, #tpu.memory_space<vmem>>, vector<8x32xf32>
    %4 = arith.truncf %3 : vector<8x32xf32> to vector<8x32xbf16>
    %c0_2 = arith.constant 0 : index
    %c0_3 = arith.constant 0 : index
    %c0_4 = arith.constant 0 : index
    %5 = vector.load %arg4[%c0_2, %c0_3, %c0_4] : memref<1x32x96xbf16, #tpu.memory_space<vmem>>, vector<1x32x96xbf16>
    %6 = vector.shape_cast %5 : vector<1x32x96xbf16> to vector<32x96xbf16>
    %cst = arith.constant dense<0.000000e+00> : vector<8x96xf32>
    %7 = tpu.matmul %4, %6, %cst {dimension_numbers = #tpu.dot_dimension_numbers<[1], [0], [0], [1], [0, 0, 1, 1], [], []>} : vector<8x32xbf16>, vector<32x96xbf16>, vector<8x96xf32> -> vector<8x96xf32>
    %c0_5 = arith.constant 0 : index
    %c0_6 = arith.constant 0 : index
    %c0_7 = arith.constant 0 : index
    %8 = vector.load %arg5[%c0_5, %c0_6, %c0_7] : memref<1x1x96xf32, #tpu.memory_space<vmem>>, vector<1x1x96xf32>
    %9 = vector.shape_cast %8 : vector<1x1x96xf32> to vector<1x96xf32>
    %10 = vector.broadcast %9 : vector<1x96xf32> to vector<8x96xf32>
    %11 = arith.addf %7, %10 : vector<8x96xf32>
    %12 = vector.extract_strided_slice %11 {offsets = [0, 0], sizes = [8, 8], strides = [1, 1]} : vector<8x96xf32> to vector<8x8xf32>
    %13 = vector.shape_cast %12 : vector<8x8xf32> to vector<1x8x8xf32>
    %14 = vector.extract_strided_slice %11 {offsets = [0, 8], sizes = [8, 8], strides = [1, 1]} : vector<8x96xf32> to vector<8x8xf32>
    %15 = vector.shape_cast %14 : vector<8x8xf32> to vector<1x8x8xf32>
    %16 = vector.extract_strided_slice %11 {offsets = [0, 16], sizes = [8, 8], strides = [1, 1]} : vector<8x96xf32> to vector<8x8xf32>
    %17 = vector.shape_cast %16 : vector<8x8xf32> to vector<1x8x8xf32>
    %18 = vector.extract_strided_slice %11 {offsets = [0, 24], sizes = [8, 8], strides = [1, 1]} : vector<8x96xf32> to vector<8x8xf32>
    %19 = vector.shape_cast %18 : vector<8x8xf32> to vector<1x8x8xf32>
    %20 = tpu.concatenate %13, %15, %17, %19 in 0 : vector<1x8x8xf32>, vector<1x8x8xf32>, vector<1x8x8xf32>, vector<1x8x8xf32> -> vector<4x8x8xf32>
    %21 = arith.truncf %20 : vector<4x8x8xf32> to vector<4x8x8xbf16>
    %22 = vector.extract_strided_slice %11 {offsets = [0, 32], sizes = [8, 8], strides = [1, 1]} : vector<8x96xf32> to vector<8x8xf32>
    %23 = vector.shape_cast %22 : vector<8x8xf32> to vector<1x8x8xf32>
    %24 = vector.extract_strided_slice %11 {offsets = [0, 40], sizes = [8, 8], strides = [1, 1]} : vector<8x96xf32> to vector<8x8xf32>
    %25 = vector.shape_cast %24 : vector<8x8xf32> to vector<1x8x8xf32>
    %26 = vector.extract_strided_slice %11 {offsets = [0, 48], sizes = [8, 8], strides = [1, 1]} : vector<8x96xf32> to vector<8x8xf32>
    %27 = vector.shape_cast %26 : vector<8x8xf32> to vector<1x8x8xf32>
    %28 = vector.extract_strided_slice %11 {offsets = [0, 56], sizes = [8, 8], strides = [1, 1]} : vector<8x96xf32> to vector<8x8xf32>
    %29 = vector.shape_cast %28 : vector<8x8xf32> to vector<1x8x8xf32>
    %30 = tpu.concatenate %23, %25, %27, %29 in 0 : vector<1x8x8xf32>, vector<1x8x8xf32>, vector<1x8x8xf32>, vector<1x8x8xf32> -> vector<4x8x8xf32>
    %31 = arith.truncf %30 : vector<4x8x8xf32> to vector<4x8x8xbf16>
    %32 = vector.extract_strided_slice %11 {offsets = [0, 64], sizes = [8, 8], strides = [1, 1]} : vector<8x96xf32> to vector<8x8xf32>
    %33 = vector.shape_cast %32 : vector<8x8xf32> to vector<1x8x8xf32>
    %34 = vector.extract_strided_slice %11 {offsets = [0, 72], sizes = [8, 8], strides = [1, 1]} : vector<8x96xf32> to vector<8x8xf32>
    %35 = vector.shape_cast %34 : vector<8x8xf32> to vector<1x8x8xf32>
    %36 = vector.extract_strided_slice %11 {offsets = [0, 80], sizes = [8, 8], strides = [1, 1]} : vector<8x96xf32> to vector<8x8xf32>
    %37 = vector.shape_cast %36 : vector<8x8xf32> to vector<1x8x8xf32>
    %38 = vector.extract_strided_slice %11 {offsets = [0, 88], sizes = [8, 8], strides = [1, 1]} : vector<8x96xf32> to vector<8x8xf32>
    %39 = vector.shape_cast %38 : vector<8x8xf32> to vector<1x8x8xf32>
    %40 = tpu.concatenate %33, %35, %37, %39 in 0 : vector<1x8x8xf32>, vector<1x8x8xf32>, vector<1x8x8xf32>, vector<1x8x8xf32> -> vector<4x8x8xf32>
    %41 = arith.truncf %40 : vector<4x8x8xf32> to vector<4x8x8xbf16>
    "tpu.trace_start"() <{level = 10 : i32, message = "hqd,hkd->hqk"}> : () -> ()
    %cst_8 = arith.constant dense<0.000000e+00> : vector<4x8x8xf32>
    %42 = tpu.matmul %21, %31, %cst_8 {dimension_numbers = #tpu.dot_dimension_numbers<[2], [2], [1], [1], [0, 0, 0, 1, 1, 1], [0], [0]>} : vector<4x8x8xbf16>, vector<4x8x8xbf16>, vector<4x8x8xf32> -> vector<4x8x8xf32>
    "tpu.trace_stop"() : () -> ()
    %c0_9 = arith.constant 0 : index
    %c0_10 = arith.constant 0 : index
    %c0_11 = arith.constant 0 : index
    %43 = vector.load %arg3[%c0_9, %c0_10, %c0_11] : memref<1x1x8xf32, #tpu.memory_space<vmem>>, vector<1x1x8xf32>
    %44 = vector.broadcast %43 : vector<1x1x8xf32> to vector<4x8x8xf32>
    %45 = arith.addf %42, %44 : vector<4x8x8xf32>
    %cst_12 = arith.constant dense<0xFF800000> : vector<4x8xf32>
    %46 = vector.multi_reduction <maximumf>, %45, %cst_12 [2] : vector<4x8x8xf32> to vector<4x8xf32>
    %47 = vector.shape_cast %46 : vector<4x8xf32> to vector<4x8x1xf32>
    %48 = vector.broadcast %47 : vector<4x8x1xf32> to vector<4x8x8xf32>
    %49 = arith.subf %45, %48 : vector<4x8x8xf32>
    %50 = math.exp %49 : vector<4x8x8xf32>
    %cst_13 = arith.constant dense<0.000000e+00> : vector<4x8xf32>
    %51 = vector.multi_reduction <add>, %50, %cst_13 [2] : vector<4x8x8xf32> to vector<4x8xf32>
    %52 = vector.shape_cast %51 : vector<4x8xf32> to vector<4x8x1xf32>
    %53 = tpu.reciprocal %52 : vector<4x8x1xf32> -> vector<4x8x1xf32>
    %54 = vector.broadcast %53 : vector<4x8x1xf32> to vector<4x8x8xf32>
    %55 = arith.mulf %50, %54 : vector<4x8x8xf32>
    %56 = arith.truncf %55 : vector<4x8x8xf32> to vector<4x8x8xbf16>
    "tpu.trace_start"() <{level = 10 : i32, message = "hqk,hkd->hqd"}> : () -> ()
    %cst_14 = arith.constant dense<0.000000e+00> : vector<4x8x8xf32>
    %57 = tpu.matmul %56, %41, %cst_14 {dimension_numbers = #tpu.dot_dimension_numbers<[2], [1], [1], [2], [0, 0, 0, 1, 1, 2], [0], [0]>} : vector<4x8x8xbf16>, vector<4x8x8xbf16>, vector<4x8x8xf32> -> vector<4x8x8xf32>
    "tpu.trace_stop"() : () -> ()
    %58 = vector.extract_strided_slice %57 {offsets = [0, 0, 0], sizes = [1, 8, 8], strides = [1, 1, 1]} : vector<4x8x8xf32> to vector<1x8x8xf32>
    %59 = vector.shape_cast %58 : vector<1x8x8xf32> to vector<8x8xf32>
    %60 = vector.extract_strided_slice %57 {offsets = [1, 0, 0], sizes = [1, 8, 8], strides = [1, 1, 1]} : vector<4x8x8xf32> to vector<1x8x8xf32>
    %61 = vector.shape_cast %60 : vector<1x8x8xf32> to vector<8x8xf32>
    %62 = vector.extract_strided_slice %57 {offsets = [2, 0, 0], sizes = [1, 8, 8], strides = [1, 1, 1]} : vector<4x8x8xf32> to vector<1x8x8xf32>
    %63 = vector.shape_cast %62 : vector<1x8x8xf32> to vector<8x8xf32>
    %64 = vector.extract_strided_slice %57 {offsets = [3, 0, 0], sizes = [1, 8, 8], strides = [1, 1, 1]} : vector<4x8x8xf32> to vector<1x8x8xf32>
    %65 = vector.shape_cast %64 : vector<1x8x8xf32> to vector<8x8xf32>
    %66 = tpu.concatenate %59, %61, %63, %65 in 1 : vector<8x8xf32>, vector<8x8xf32>, vector<8x8xf32>, vector<8x8xf32> -> vector<8x32xf32>
    %67 = arith.truncf %66 : vector<8x32xf32> to vector<8x32xbf16>
    %c0_15 = arith.constant 0 : index
    %c0_16 = arith.constant 0 : index
    %c0_17 = arith.constant 0 : index
    %68 = vector.load %arg6[%c0_15, %c0_16, %c0_17] : memref<1x32x32xbf16, #tpu.memory_space<vmem>>, vector<1x32x32xbf16>
    %69 = vector.shape_cast %68 : vector<1x32x32xbf16> to vector<32x32xbf16>
    %cst_18 = arith.constant dense<0.000000e+00> : vector<8x32xf32>
    %70 = tpu.matmul %67, %69, %cst_18 {dimension_numbers = #tpu.dot_dimension_numbers<[1], [0], [0], [1], [0, 0, 1, 1], [], []>} : vector<8x32xbf16>, vector<32x32xbf16>, vector<8x32xf32> -> vector<8x32xf32>
    %c0_19 = arith.constant 0 : index
    %c0_20 = arith.constant 0 : index
    %c0_21 = arith.constant 0 : index
    %71 = vector.load %arg7[%c0_19, %c0_20, %c0_21] : memref<1x1x32xf32, #tpu.memory_space<vmem>>, vector<1x1x32xf32>
    %72 = vector.shape_cast %71 : vector<1x1x32xf32> to vector<1x32xf32>
    %73 = vector.broadcast %72 : vector<1x32xf32> to vector<8x32xf32>
    %74 = arith.addf %70, %73 : vector<8x32xf32>
    %75 = arith.addf %3, %74 : vector<8x32xf32>
    %c0_22 = arith.constant 0 : index
    %c0_23 = arith.constant 0 : index
    %c0_24 = arith.constant 0 : index
    %76 = vector.load %arg8[%c0_22, %c0_23, %c0_24] : memref<1x1x32xf32, #tpu.memory_space<vmem>>, vector<1x1x32xf32>
    %77 = vector.shape_cast %76 : vector<1x1x32xf32> to vector<1x32xf32>
    %c0_25 = arith.constant 0 : index
    %c0_26 = arith.constant 0 : index
    %c0_27 = arith.constant 0 : index
    %78 = vector.load %arg9[%c0_25, %c0_26, %c0_27] : memref<1x1x32xf32, #tpu.memory_space<vmem>>, vector<1x1x32xf32>
    %79 = vector.shape_cast %78 : vector<1x1x32xf32> to vector<1x32xf32>
    %cst_28 = arith.constant dense<0.000000e+00> : vector<8xf32>
    %80 = vector.multi_reduction <add>, %75, %cst_28 [1] : vector<8x32xf32> to vector<8xf32>
    %81 = vector.shape_cast %80 : vector<8xf32> to vector<8x1xf32>
    %cst_29 = arith.constant 3.200000e+01 : f32
    %82 = vector.broadcast %cst_29 : f32 to vector<8x1xf32>
    %83 = arith.divf %81, %82 : vector<8x1xf32>
    %84 = vector.broadcast %83 : vector<8x1xf32> to vector<8x32xf32>
    %85 = arith.subf %75, %84 : vector<8x32xf32>
    %86 = arith.mulf %85, %85 : vector<8x32xf32>
    %cst_30 = arith.constant dense<0.000000e+00> : vector<8xf32>
    %87 = vector.multi_reduction <add>, %86, %cst_30 [1] : vector<8x32xf32> to vector<8xf32>
    %88 = vector.shape_cast %87 : vector<8xf32> to vector<8x1xf32>
    %cst_31 = arith.constant 3.200000e+01 : f32
    %89 = vector.broadcast %cst_31 : f32 to vector<8x1xf32>
    %90 = arith.divf %88, %89 : vector<8x1xf32>
    %cst_32 = arith.constant 9.99999974E-6 : f32
    %91 = vector.broadcast %cst_32 : f32 to vector<8x1xf32>
    %92 = arith.addf %90, %91 : vector<8x1xf32>
    %93 = math.rsqrt %92 : vector<8x1xf32>
    %94 = vector.broadcast %93 : vector<8x1xf32> to vector<8x32xf32>
    %95 = arith.mulf %85, %94 : vector<8x32xf32>
    %96 = vector.broadcast %77 : vector<1x32xf32> to vector<8x32xf32>
    %97 = arith.mulf %95, %96 : vector<8x32xf32>
    %98 = vector.broadcast %79 : vector<1x32xf32> to vector<8x32xf32>
    %99 = arith.addf %97, %98 : vector<8x32xf32>
    %100 = arith.truncf %99 : vector<8x32xf32> to vector<8x32xbf16>
    %c0_33 = arith.constant 0 : index
    %c0_34 = arith.constant 0 : index
    %c0_35 = arith.constant 0 : index
    %101 = vector.load %arg10[%c0_33, %c0_34, %c0_35] : memref<1x32x64xbf16, #tpu.memory_space<vmem>>, vector<1x32x64xbf16>
    %102 = vector.shape_cast %101 : vector<1x32x64xbf16> to vector<32x64xbf16>
    %cst_36 = arith.constant dense<0.000000e+00> : vector<8x64xf32>
    %103 = tpu.matmul %100, %102, %cst_36 {dimension_numbers = #tpu.dot_dimension_numbers<[1], [0], [0], [1], [0, 0, 1, 1], [], []>} : vector<8x32xbf16>, vector<32x64xbf16>, vector<8x64xf32> -> vector<8x64xf32>
    %c0_37 = arith.constant 0 : index
    %c0_38 = arith.constant 0 : index
    %c0_39 = arith.constant 0 : index
    %104 = vector.load %arg11[%c0_37, %c0_38, %c0_39] : memref<1x1x64xf32, #tpu.memory_space<vmem>>, vector<1x1x64xf32>
    %105 = vector.shape_cast %104 : vector<1x1x64xf32> to vector<1x64xf32>
    %106 = vector.broadcast %105 : vector<1x64xf32> to vector<8x64xf32>
    %107 = arith.addf %103, %106 : vector<8x64xf32>
    %cst_40 = arith.constant 0.000000e+00 : f32
    %108 = vector.broadcast %cst_40 : f32 to vector<8x64xf32>
    %109 = arith.maximumf %107, %108 : vector<8x64xf32>
    %110 = arith.truncf %109 : vector<8x64xf32> to vector<8x64xbf16>
    %c0_41 = arith.constant 0 : index
    %c0_42 = arith.constant 0 : index
    %c0_43 = arith.constant 0 : index
    %111 = vector.load %arg12[%c0_41, %c0_42, %c0_43] : memref<1x64x32xbf16, #tpu.memory_space<vmem>>, vector<1x64x32xbf16>
    %112 = vector.shape_cast %111 : vector<1x64x32xbf16> to vector<64x32xbf16>
    %cst_44 = arith.constant dense<0.000000e+00> : vector<8x32xf32>
    %113 = tpu.matmul %110, %112, %cst_44 {dimension_numbers = #tpu.dot_dimension_numbers<[1], [0], [0], [1], [0, 0, 1, 1], [], []>} : vector<8x64xbf16>, vector<64x32xbf16>, vector<8x32xf32> -> vector<8x32xf32>
    %c0_45 = arith.constant 0 : index
    %c0_46 = arith.constant 0 : index
    %c0_47 = arith.constant 0 : index
    %114 = vector.load %arg13[%c0_45, %c0_46, %c0_47] : memref<1x1x32xf32, #tpu.memory_space<vmem>>, vector<1x1x32xf32>
    %115 = vector.shape_cast %114 : vector<1x1x32xf32> to vector<1x32xf32>
    %116 = vector.broadcast %115 : vector<1x32xf32> to vector<8x32xf32>
    %117 = arith.addf %113, %116 : vector<8x32xf32>
    %118 = arith.addf %99, %117 : vector<8x32xf32>
    %c0_48 = arith.constant 0 : index
    %c0_49 = arith.constant 0 : index
    %c0_50 = arith.constant 0 : index
    %119 = vector.load %arg14[%c0_48, %c0_49, %c0_50] : memref<1x1x32xf32, #tpu.memory_space<vmem>>, vector<1x1x32xf32>
    %120 = vector.shape_cast %119 : vector<1x1x32xf32> to vector<1x32xf32>
    %c0_51 = arith.constant 0 : index
    %c0_52 = arith.constant 0 : index
    %c0_53 = arith.constant 0 : index
    %121 = vector.load %arg15[%c0_51, %c0_52, %c0_53] : memref<1x1x32xf32, #tpu.memory_space<vmem>>, vector<1x1x32xf32>
    %122 = vector.shape_cast %121 : vector<1x1x32xf32> to vector<1x32xf32>
    %cst_54 = arith.constant dense<0.000000e+00> : vector<8xf32>
    %123 = vector.multi_reduction <add>, %118, %cst_54 [1] : vector<8x32xf32> to vector<8xf32>
    %124 = vector.shape_cast %123 : vector<8xf32> to vector<8x1xf32>
    %cst_55 = arith.constant 3.200000e+01 : f32
    %125 = vector.broadcast %cst_55 : f32 to vector<8x1xf32>
    %126 = arith.divf %124, %125 : vector<8x1xf32>
    %127 = vector.broadcast %126 : vector<8x1xf32> to vector<8x32xf32>
    %128 = arith.subf %118, %127 : vector<8x32xf32>
    %129 = arith.mulf %128, %128 : vector<8x32xf32>
    %cst_56 = arith.constant dense<0.000000e+00> : vector<8xf32>
    %130 = vector.multi_reduction <add>, %129, %cst_56 [1] : vector<8x32xf32> to vector<8xf32>
    %131 = vector.shape_cast %130 : vector<8xf32> to vector<8x1xf32>
    %cst_57 = arith.constant 3.200000e+01 : f32
    %132 = vector.broadcast %cst_57 : f32 to vector<8x1xf32>
    %133 = arith.divf %131, %132 : vector<8x1xf32>
    %cst_58 = arith.constant 9.99999974E-6 : f32
    %134 = vector.broadcast %cst_58 : f32 to vector<8x1xf32>
    %135 = arith.addf %133, %134 : vector<8x1xf32>
    %136 = math.rsqrt %135 : vector<8x1xf32>
    %137 = vector.broadcast %136 : vector<8x1xf32> to vector<8x32xf32>
    %138 = arith.mulf %128, %137 : vector<8x32xf32>
    %139 = vector.broadcast %120 : vector<1x32xf32> to vector<8x32xf32>
    %140 = arith.mulf %138, %139 : vector<8x32xf32>
    %141 = vector.broadcast %122 : vector<1x32xf32> to vector<8x32xf32>
    %142 = arith.addf %140, %141 : vector<8x32xf32>
    %c0_59 = arith.constant 0 : index
    %c0_60 = arith.constant 0 : index
    %143 = vector.load %arg16[%c0_59, %c0_60] : memref<8x32xf32, #tpu.memory_space<vmem>>, vector<8x32xf32>
    tpu.vector_store %arg16[%c0_59, %c0_60], %142 {strides = array<i32>} : memref<8x32xf32, #tpu.memory_space<vmem>>, vector<8x32xf32>,
    return
  }
  func.func @transform_0(%arg0: i32, %arg1: i32) -> (i32, i32) {
    %c0_i32 = arith.constant 0 : i32
    %c0_i32_0 = arith.constant 0 : i32
    return %arg0, %c0_i32 : i32, i32
  }
  func.func @transform_1(%arg0: i32, %arg1: i32) -> (i32, i32, i32) {
    %c0_i32 = arith.constant 0 : i32
    %c0_i32_0 = arith.constant 0 : i32
    %c0_i32_1 = arith.constant 0 : i32
    return %arg0, %c0_i32, %c0_i32_0 : i32, i32, i32
  }
  func.func @transform_2(%arg0: i32, %arg1: i32) -> (i32, i32, i32) {
    %c0_i32 = arith.constant 0 : i32
    %c0_i32_0 = arith.constant 0 : i32
    %c0_i32_1 = arith.constant 0 : i32
    return %arg1, %c0_i32, %c0_i32_0 : i32, i32, i32
  }
  func.func @transform_3(%arg0: i32, %arg1: i32) -> (i32, i32, i32) {
    %c0_i32 = arith.constant 0 : i32
    %c0_i32_0 = arith.constant 0 : i32
    %c0_i32_1 = arith.constant 0 : i32
    return %arg1, %c0_i32, %c0_i32_0 : i32, i32, i32
  }
  func.func @transform_4(%arg0: i32, %arg1: i32) -> (i32, i32, i32) {
    %c0_i32 = arith.constant 0 : i32
    %c0_i32_0 = arith.constant 0 : i32
    %c0_i32_1 = arith.constant 0 : i32
    return %arg1, %c0_i32, %c0_i32_0 : i32, i32, i32
  }
  func.func @transform_5(%arg0: i32, %arg1: i32) -> (i32, i32, i32) {
    %c0_i32 = arith.constant 0 : i32
    %c0_i32_0 = arith.constant 0 : i32
    %c0_i32_1 = arith.constant 0 : i32
    return %arg1, %c0_i32, %c0_i32_0 : i32, i32, i32
  }
  func.func @transform_6(%arg0: i32, %arg1: i32) -> (i32, i32, i32) {
    %c0_i32 = arith.constant 0 : i32
    %c0_i32_0 = arith.constant 0 : i32
    %c0_i32_1 = arith.constant 0 : i32
    return %arg1, %c0_i32, %c0_i32_0 : i32, i32, i32
  }
  func.func @transform_7(%arg0: i32, %arg1: i32) -> (i32, i32, i32) {
    %c0_i32 = arith.constant 0 : i32
    %c0_i32_0 = arith.constant 0 : i32
    %c0_i32_1 = arith.constant 0 : i32
    return %arg1, %c0_i32, %c0_i32_0 : i32, i32, i32
  }
  func.func @transform_8(%arg0: i32, %arg1: i32) -> (i32, i32, i32) {
    %c0_i32 = arith.constant 0 : i32
    %c0_i32_0 = arith.constant 0 : i32
    %c0_i32_1 = arith.constant 0 : i32
    return %arg1, %c0_i32, %c0_i32_0 : i32, i32, i32
  }
  func.func @transform_9(%arg0: i32, %arg1: i32) -> (i32, i32, i32) {
    %c0_i32 = arith.constant 0 : i32
    %c0_i32_0 = arith.constant 0 : i32
    %c0_i32_1 = arith.constant 0 : i32
    return %arg1, %c0_i32, %c0_i32_0 : i32, i32, i32
  }
  func.func @transform_10(%arg0: i32, %arg1: i32) -> (i32, i32, i32) {
    %c0_i32 = arith.constant 0 : i32
    %c0_i32_0 = arith.constant 0 : i32
    %c0_i32_1 = arith.constant 0 : i32
    return %arg1, %c0_i32, %c0_i32_0 : i32, i32, i32
  }
  func.func @transform_11(%arg0: i32, %arg1: i32) -> (i32, i32, i32) {
    %c0_i32 = arith.constant 0 : i32
    %c0_i32_0 = arith.constant 0 : i32
    %c0_i32_1 = arith.constant 0 : i32
    return %arg1, %c0_i32, %c0_i32_0 : i32, i32, i32
  }
  func.func @transform_12(%arg0: i32, %arg1: i32) -> (i32, i32, i32) {
    %c0_i32 = arith.constant 0 : i32
    %c0_i32_0 = arith.constant 0 : i32
    %c0_i32_1 = arith.constant 0 : i32
    return %arg1, %c0_i32, %c0_i32_0 : i32, i32, i32
  }
  func.func @transform_13(%arg0: i32, %arg1: i32) -> (i32, i32, i32) {
    %c0_i32 = arith.constant 0 : i32
    %c0_i32_0 = arith.constant 0 : i32
    %c0_i32_1 = arith.constant 0 : i32
    return %arg1, %c0_i32, %c0_i32_0 : i32, i32, i32
  }
  func.func @transform_14(%arg0: i32, %arg1: i32) -> (i32, i32) {
    %c0_i32 = arith.constant 0 : i32
    %c0_i32_0 = arith.constant 0 : i32
    return %arg0, %c0_i32 : i32, i32
  }
}

</mosaic_0001>

<bundles_post_ra>
// kernel: transformer_encoder_forward.1
= control target key start
LH: loop header
LB: loop body
LE: loop exit
PB: predicated region body
PF: predicated region fallthrough
CT: control target
= control target key end

     0   :  { %s1729_s29 = smov 0   ;;  %s1731_s30 = smov 0   ;;  %s1961_s0 = inlined_call_operand.vmem [shape: f32[16,32], index: 0, kind: input, shape index: {}]   ;;  %s1962_s1 = inlined_call_operand.vmem [shape: f32[2,1,8], index: 1, kind: input, shape index: {}]   ;;  %s1963_s2 = inlined_call_operand.vmem [shape: bf16[2,32,96], index: 2, kind: input, shape index: {}]   ;;  %s1964_s3 = inlined_call_operand.vmem [shape: f32[2,1,96], index: 3, kind: input, shape index: {}]   ;;  %s1965_s4 = inlined_call_operand.vmem [shape: bf16[2,32,32], index: 4, kind: input, shape index: {}]   ;;  %s1966_s5 = inlined_call_operand.vmem [shape: f32[2,1,32], index: 5, kind: input, shape index: {}]   ;;  %s1967_s6 = inlined_call_operand.vmem [shape: f32[2,1,32], index: 6, kind: input, shape index: {}]   ;;  %s1968_s7 = inlined_call_operand.vmem [shape: f32[2,1,32], index: 7, kind: input, shape index: {}]   ;;  %s1969_s8 = inlined_call_operand.vmem [shape: bf16[2,32,64], index: 8, kind: input, shape index: {}]   ;;  %s1970_s9 = inlined_call_operand.vmem [shape: f32[2,1,64], index: 9, kind: input, shape index: {}]   ;;  %s1971_s10 = inlined_call_operand.vmem [shape: bf16[2,64,32], index: 10, kind: input, shape index: {}]   ;;  %s1972_s11 = inlined_call_operand.vmem [shape: f32[2,1,32], index: 11, kind: input, shape index: {}]   ;;  %s1973_s12 = inlined_call_operand.vmem [shape: f32[2,1,32], index: 12, kind: input, shape index: {}]   ;;  %s1974_s13 = inlined_call_operand.vmem [shape: f32[2,1,32], index: 13, kind: input, shape index: {}]   ;;  %s1975_s14 = inlined_call_operand.vmem [shape: f32[16,32], index: 14, kind: output, shape index: {}]  }
   0x1   :  { %1980 = sst [smem:[#allocation8_spill]] %s1961_s0  ;;  %s1733_s15 = smov 0  }
   0x2   :  { %1981 = sst [smem:[#allocation9_spill]] %s1962_s1  ;;  %s1735_s16 = smov 0  }
   0x3   :  { %1982 = sst [smem:[#allocation10_spill]] %s1963_s2  ;;  %s1737_s17 = smov 0  }
   0x4   :  { %1983 = sst [smem:[#allocation11_spill]] %s1964_s3 }
   0x5   :  { %1984 = sst [smem:[#allocation12_spill]] %s1965_s4 }
   0x6   :  { %1985 = sst [smem:[#allocation13_spill]] %s1968_s7 }
   0x7   :  { %1986 = sst [smem:[#allocation14_spill]] %s1969_s8 }
   0x8   :  { %1987 = sst [smem:[#allocation15_spill]] %s1970_s9 }
   0x9   :  { %1988 = sst [smem:[#allocation16_spill]] %s1973_s12 }
   0xa   :  { %1989 = sst [smem:[#allocation17_spill]] %s1974_s13 }
   0xb   :  { %1990 = sst [smem:[#allocation18_spill]] %s1975_s14 }
   0xc LB: > { %1991 = sst [smem:[#allocation2_spill]] %s1627_s29  ;;  %s33_s18 = sadd.s32 1, %s1635_s15  ;;  %s1643_s17 = sphi %s1737_s17, %s24_s17   ;;  %s1639_s16 = sphi %s1735_s16, %s2023_s16   ;;  %s1635_s15 = sphi %s1733_s15, %s2022_s15   ;;  %s1631_s30 = sphi %s1731_s30, %s2021_s30   ;;  %s1627_s29 = sphi %s1729_s29, %s2020_s29  }
   0xd   : > { %1992 = sst [smem:[#allocation3_spill]] %s1635_s15  ;;  %s36_s19 = sadd.s32 1, %s1639_s16 }
   0xe   : > { %1993 = sst [smem:[#allocation4_spill]] %s1639_s16  ;;  %p34_p0 = scmp.ge.s32.totalorder %s33_s18, 2 }
   0xf   : > { %1994 = sst [smem:[#allocation5_spill]] %s1643_s17  ;;  %p1445_p1 = scmp.ge.s32.totalorder %s1643_s17, 1 }
  0x10   : > { %p535_p2 = scmp.lt.s32.totalorder %s1643_s17, 5  ;;  %s2025_s18 = smov (%p34_p0, %s33_s18), 0 }
  0x11   : > { %1995 = sst [smem:[#allocation6_spill]] %s2025_s18  ;;  %s2027_s19 = smov (!%p34_p0, %s36_s19), %s1639_s16 }
  0x12   : > { %p536_p3 = pnand %p1445_p1, %p535_p2  ;;  %p38_p4 = scmp.ge.s32.totalorder %s2027_s19, 2 }
  0x13   : > { %p626_p5 = scmp.lt.s32.totalorder (!%p536_p3), %s1631_s30, 1  ;;  %p633_p6 = scmp.lt.s32.totalorder (!%p536_p3), %s1627_s29, 1 }
  0x14   : > { %s2029_s19 = smov (%p38_p4, %s2027_s19), 0  ;;  %539 = sbr.rel (%p536_p3) target bundleno = 2014 (0x7de), region = 76 }
  0x15   : > { %1996 = sst [smem:[#allocation7_spill]] %s2029_s19 }
  0x16   : > { %s1998_s0 = sld [smem:[#allocation8_spill]] (!%p536_p3) }
  0x17   : > { %s1999_s2 = sld [smem:[#allocation10_spill]] (!%p536_p3) }
  0x18   : > { %s2000_s3 = sld [smem:[#allocation11_spill]] (!%p536_p3) }
  0x19   : > { %s2031_s30 = smov (!%p626_p5, %s1631_s30), 1  ;;  %s2001_s4 = sld [smem:[#allocation12_spill]] }
  0x1a   : > { %s1765_s20 = scalar_select %p633_p6, %s1627_s29, 1 }
  0x1b   : > { %s1446_s21 = sshll.u32 %s2031_s30, 3  ;;  %s2003_s8 = sld [smem:[#allocation14_spill]] }
  0x1c   : > { %s629_s27 = scalar_lea.vmem %s1998_s0, %s1446_s21  ;;  %s1511_s28 = sshll.u32 %s1765_s20, 4 }
  0x1d   : > { %s637_s16 = scalar_lea.vmem %s1999_s2, %s1511_s28  ;;  %s670_s24 = scalar_lea.vmem %s1972_s11, %s1765_s20 }
  0x1e   : > { %s640_s29 = scalar_lea.vmem %s2000_s3, %s1765_s20  ;;  %s2005_s19 = sld [smem:[#allocation16_spill]] }
  0x1f   : > { %s1786_s12 = scalar_lea.vmem %s2001_s4, %s1511_s28  ;;  %s1514_s4 = sshll.u32 %s1765_s20, 5 }
  0x20   : > { %s1817_s0 = scalar_lea.vmem %s1971_s10, %s1514_s4  ;;  %s2007_s3 = sld [smem:[#allocation18_spill]] }
  0x21   : > { %s1803_s17 = scalar_lea.vmem %s2003_s8, %s1511_s28  ;;  %s2006_s8 = sld [smem:[#allocation17_spill]] }
  0x22   : > { %s2008_s22 = sld [smem:[#allocation2_spill]] }
  0x24   : > { %s673_s2 = scalar_lea.vmem %s2005_s19, %s1765_s20 }
  0x26   : > { %s1830_s9 = scalar_lea.vmem %s2007_s3, %s1446_s21 }
  0x27   : > { %s676_s7 = scalar_lea.vmem %s2006_s8, %s1765_s20 }
  0x28   : > { %p1456_p7 = scmp.ne.s32.totalorder %s2008_s22, 0 }
  0x2a   : > { %685 = sbr.rel (%p1456_p7) target bundleno = 49 (0x31), region = 80 }
  0x2f   : > { %v686_v0 = vld [vmem:[%s629_s27] sm:$0xff]  ;;  %vm687_vm0 = vcmask 261120  }
  0x30   : > { %688 = vst.msk [vmem:[%s1830_s9] sm:$0xff] %vm687_vm0, %v686_v0 }
  0x31 PF: > { %v1516_v1 = vld [vmem:[%s637_s16 + $0x8] sm:$0xff]  ;;  %v1515_v2 = vld [vmem:[%s637_s16] sm:$0xff]  ;;  %vm711_vm1 = vcmask 261120   ;;  %s1645_s3 = smov 104   ;;  %s1646_s4 = smov 120   ;;  %vm751_vm2 = vcmask 64512  }
  0x32   : > { %721 = vmatpush.bf16.msra.mxu0 %v1516_v1  ;;  %v1574_v5 = vld [vmem:[%s640_s29] ss:$0 sm:$0xff]  ;;  %s1647_s8 = smov 112   ;;  %s1648_s16 = smov 96   ;;  %vm948_vm3 = vcmask 1043456  }
  0x33   : > { %s2009_s27 = sld [smem:[#allocation9_spill]]  ;;  %s1650_s23 = smov 16  }
  0x34   : > { %s1651_s25 = smov 8   ;;  %s1652_s26 = smov 24  }
  0x35   : > { %s2011_s28 = scalar_lea.vmem %s1966_s5, %s1765_s20  ;;  %s2012_s15 = scalar_lea.vmem %s1967_s6, %s1765_s20 }
  0x36   : > { %722 = vmatpush.bf16.msra.mxu0 %v1515_v2  ;;  %s2013_s22 = sld [smem:[#allocation13_spill]] }
  0x37   : > { %v1835_v3 = vld [vmem:[%s1830_s9] sm:$0xff] }
  0x38   : > { %v690_v4 = vpack.c.bf16 %v1835_v3, %v1835_v3 }
  0x39   : > { %s2010_s19 = scalar_lea.vmem %s2009_s27, %s2031_s30  ;;  %s1649_s30 = smov 64  }
  0x3a   : > { %1465 = vmatmul.msk.bf16.vlgmr.msra.gmra.mxu0 %vm711_vm1, %v690_v4  ;;  %v1575_v34 = vld [vmem:[%s2010_s19] ss:$0 sm:$0xff] }
  0xb7   : > { %v724_v6 = vpop.f32.mrf.mxu0 }
  0xb8   : > { %v725_v7 = vadd.f32 %v1574_v5, %v724_v6 }
  0xba   : > { %735 = vrot.lane.b32.xlu1 %v725_v7, %s1645_s3  ;;  %729 = vrot.lane.b32.xlu0 %v725_v7, %s1646_s4  ;;  %v738_v9 = vpack.c.bf16 %v725_v7, %v725_v7  ;;  %s2014_s3 = scalar_lea.vmem %s2013_s22, %s1765_s20 }
  0xbc   : > { %v747_v10 = vunpack.c.l.b16 %v738_v9 }
  0xbe   : > { %v1840_v11 = vpack.c.b16 %v747_v10, %v747_v10 }
  0xbf   : > { %v726_v8 = vpop.f32.mrf.mxu0 }
  0xc2   : > { %732 = vrot.lane.b32.xlu0 %v725_v7, %s1647_s8 }
  0xca   : > { %749 = vrot.lane.b32.xlu0 %v1840_v11, %s1648_s16 }
 0x12c   : > { %v730_v12 = vpop.permute.xlu0 %729  ;;  %v736_v18 = vpop.permute.xlu1 %735 }
 0x12d   : > { %v739_v13 = vpack.c.bf16 %v730_v12, %v730_v12  ;;  %v741_v20 = vpack.c.bf16 %v736_v18, %v736_v18 }
 0x12f   : > { %v772_v14 = vunpack.c.l.b16 %v739_v13  ;;  %v820_v23 = vunpack.c.l.b16 %v741_v20 }
 0x131   : > { %v1843_v15 = vpack.c.b16 %v772_v14, %v772_v14  ;;  %v821_v25 = vpack.c.b16 %v820_v23, %v820_v23 }
 0x133   : > { %774 = vrot.lane.b32.xlu1 %v1843_v15, %s1648_s16 }
 0x134   : > { %v733_v16 = vpop.permute.xlu0 %732 }
 0x135   : > { %v740_v17 = vpack.c.bf16 %v733_v16, %v733_v16 }
 0x137   : > { %v796_v19 = vunpack.c.l.b16 %v740_v17 }
 0x139   : > { %v1846_v21 = vpack.c.b16 %v796_v19, %v796_v19 }
 0x13b   : > { %798 = vrot.lane.b32.xlu2 %v1846_v21, %s1648_s16 }
 0x13c   : > { %v750_v22 = vpop.permute.xlu0 %749 }
 0x13d   : > { %v756_v24 = vsel %vm751_vm2, %v750_v22, 0 }
 0x13e   : > { %765 = vmatpush.bf16.xpose.msra.mxu1 %v756_v24 }
 0x143   : > { %822 = vrot.lane.b32.xlu2 %v821_v25, %s1648_s16  ;;  %s2015_s16 = sld [smem:[#allocation15_spill]] }
 0x145   : > { %1466 = vmatmul.msk.bf16.vlgmr.msra.gmra.mxu1 %vm751_vm2, %v738_v9 }
 0x149   : > { %s2016_s29 = scalar_lea.vmem %s2015_s16, %s1765_s20 }
 0x195   : > { %v799_v26 = vpop.permute.xlu2 %798 }
 0x196   : > { %v804_v27 = vsel %vm751_vm2, %v799_v26, 0 }
 0x197   : > { %813 = vmatpush.bf16.xpose.msra.mxu3 %v804_v27 }
 0x19d   : > { %v823_v28 = vpop.permute.xlu2 %822 }
 0x19e   : > { %1468 = vmatmul.msk.bf16.vlgmr.msra.gmra.mxu3 %vm751_vm2, %v740_v17  ;;  %v828_v29 = vsel %vm751_vm2, %v823_v28, 0 }
 0x19f   : > { %837 = vmatpush.bf16.xpose.msrb.mxu0 %v828_v29 }
 0x1a5   : > { %v775_v30 = vpop.permute.xlu1 %774 }
 0x1a6   : > { %1469 = vmatmul.msk.bf16.vlgmr.msrb.gmra.mxu0 %vm751_vm2, %v741_v20  ;;  %v780_v31 = vsel %vm751_vm2, %v775_v30, 0 }
 0x1a7   : > { %789 = vmatpush.bf16.xpose.msra.mxu2 %v780_v31 }
 0x1ae   : > { %1467 = vmatmul.msk.bf16.vlgmr.msra.gmra.mxu2 %vm751_vm2, %v739_v13 }
 0x1c2   : > { %v767_v32 = vpop.f32.mrf.mxu1 }
 0x1c3   : > { %v768_v41 = vadd.f32 %v1575_v34, %v767_v32 }
 0x1c5   : > { %v843_v44 = vsel %vm751_vm2, %v768_v41, -inf }
 0x1ca   : > { %v769_v33 = vpop.f32.mrf.mxu1 }
 0x221   : > { %v815_v35 = vpop.f32.mrf.mxu3 }
 0x222   : > { %v816_v36 = vadd.f32 %v1575_v34, %v815_v35 }
 0x223   : > { %v839_v37 = vpop.f32.mrf.mxu0 }
 0x224   : > { %v840_v38 = vadd.f32 %v1575_v34, %v839_v37  ;;  %v849_v39 = vsel %vm751_vm2, %v816_v36, -inf }
 0x225   : > { %850 = vmax.xlane.f32.xlu2 %v849_v39 }
 0x226   : > { %v852_v40 = vsel %vm751_vm2, %v840_v38, -inf }
 0x227   : > { %853 = vmax.xlane.f32.xlu0 %v852_v40 }
 0x229   : > { %v817_v42 = vpop.f32.mrf.mxu3 }
 0x22b   : > { %v841_v43 = vpop.f32.mrf.mxu0 }
 0x22d   : > { %844 = vmax.xlane.f32.xlu2 %v843_v44 }
 0x231   : > { %v791_v45 = vpop.f32.mrf.mxu2 }
 0x232   : > { %v792_v46 = vadd.f32 %v1575_v34, %v791_v45 }
 0x234   : > { %v846_v47 = vsel %vm751_vm2, %v792_v46, -inf }
 0x235   : > { %847 = vmax.xlane.f32.xlu1 %v846_v47 }
 0x239   : > { %v793_v48 = vpop.f32.mrf.mxu2 }
 0x298   : > { %v851_v49 = vpop.xlane.xlu2 %850 }
 0x299   : > { %v857_v50 = vsub.f32 %v816_v36, %v851_v49 }
 0x29a   : > { %v854_v51 = vpop.xlane.xlu0 %853 }
 0x29b   : > { %v863_v52 = vmul.f32 1.442695, %v857_v50  ;;  %v858_v53 = vsub.f32 %v840_v38, %v854_v51 }
 0x29d   : > { %1583 = vpow2.f32 %v863_v52  ;;  %v865_v54 = vmul.f32 1.442695, %v858_v53 }
 0x29f   : > { %1585 = vpow2.f32 %v865_v54 }
 0x2a0   : > { %v845_v0 = vpop.xlane.xlu2 %844 }
 0x2a1   : > { %v855_v1 = vsub.f32 %v768_v41, %v845_v0 }
 0x2a3   : > { %v1866_v55 = vpop.eup %1583  ;;  %v859_v2 = vmul.f32 1.442695, %v855_v1 }
 0x2a4   : > { %v873_v56 = vsel %vm751_vm2, %v1866_v55, 0.0 }
 0x2a5   : > { %v1586_v57 = vpop.eup %1585  ;;  %874 = vadd.xlane.f32.xlu2 %v873_v56 }
 0x2a6   : > { %v876_v58 = vsel %vm751_vm2, %v1586_v57, 0.0 }
 0x2a7   : > { %877 = vadd.xlane.f32.xlu0 %v876_v58 }
 0x2a8   : > { %v848_v59 = vpop.xlane.xlu1 %847 }
 0x2a9   : > { %v856_v60 = vsub.f32 %v792_v46, %v848_v59 }
 0x2ab   : > { %v861_v61 = vmul.f32 1.442695, %v856_v60 }
 0x2ad   : > { %1587 = vpow2.f32 %v861_v61 }
 0x2ae   : > { %1589 = vpow2.f32 %v859_v2 }
 0x2b3   : > { %v1871_v62 = vpop.eup %1587 }
 0x2b4   : > { %v870_v63 = vsel %vm751_vm2, %v1871_v62, 0.0  ;;  %v1878_v4 = vpop.eup %1589 }
 0x2b5   : > { %871 = vadd.xlane.f32.xlu1 %v870_v63  ;;  %v867_v5 = vsel %vm751_vm2, %v1878_v4, 0.0 }
 0x2bb   : > { %1007 = vrot.lane.b32.xlu0 %v821_v25, %s1649_s30 }
 0x2bd   : > { %986 = vrot.lane.b32.xlu2 %v1846_v21, %s1649_s30 }
 0x2c3   : > { %943 = vrot.lane.b32.xlu0 %v1840_v11, %s1649_s30 }
 0x2ce   : > { %965 = vrot.lane.b32.xlu1 %v1843_v15, %s1649_s30 }
 0x2f8   : > { %868 = vadd.xlane.f32.xlu1 %v867_v5 }
 0x318   : > { %v875_v6 = vpop.xlane.xlu2 %874 }
 0x319   : > { %1591 = vrcp.f32 %v875_v6  ;;  %v918_v16 = vand.u32 2147483648, %v875_v6  ;;  %vm912_vm5 = vweird.f32 %v875_v6  ;;  %v916_v18 = vand.u32 2147483647, %v875_v6 }
 0x31a   : > { %v878_v7 = vpop.xlane.xlu0 %877 }
 0x31b   : > { %1593 = vrcp.f32 %v878_v7  ;;  %v932_v19 = vand.u32 2147483648, %v878_v7  ;;  %v930_v22 = vand.u32 2147483647, %v878_v7  ;;  %v919_v23 = vor.u32 1.1754944e-38, %v918_v16 }
 0x31c   : > { %vm926_vm8 = vweird.f32 %v878_v7  ;;  %vm917_vm9 = vcmp.eq.f32.partialorder %v916_v18, 8.507059e+37 }
 0x31d   : > { %v933_v27 = vor.u32 1.1754944e-38, %v932_v19  ;;  %vm931_vm11 = vcmp.eq.f32.partialorder %v930_v22, 8.507059e+37 }
 0x31f   : > { %v1592_v8 = vpop.eup %1591 }
 0x320   : > { %v908_v9 = vmul.f32 %v1592_v8, %v875_v6  ;;  %v987_v10 = vpop.permute.xlu2 %986  ;;  %vm913_vm4 = vweird.f32 %v1592_v8 }
 0x321   : > { %v1594_v11 = vpop.eup %1593  ;;  %v992_v12 = vsel %vm948_vm3, %v987_v10, 0  ;;  %vm914_vm7 = vmor %vm912_vm5, %vm913_vm4 }
 0x322   : > { %v909_v13 = vsub.f32 1.0, %v908_v9  ;;  %v922_v14 = vmul.f32 %v1594_v11, %v878_v7  ;;  %1001 = vmatpush.bf16.msrb.mxu3 %v992_v12  ;;  %vm927_vm6 = vweird.f32 %v1594_v11  ;;  %v1517_v12 = vld [vmem:[%s1786_s12] sm:$0xff] }
 0x323   : > { %vm928_vm10 = vmor %vm926_vm8, %vm927_vm6 }
 0x324   : > { %v910_v15 = vmul.f32 %v1592_v8, %v909_v13  ;;  %v923_v17 = vsub.f32 1.0, %v922_v14 }
 0x326   : > { %v911_v20 = vadd.f32 %v1592_v8, %v910_v15  ;;  %v924_v21 = vmul.f32 %v1594_v11, %v923_v17 }
 0x328   : > { %v925_v24 = vadd.f32 %v1594_v11, %v924_v21  ;;  %v872_v25 = vpop.xlane.xlu1 %871  ;;  %v915_v26 = vsel %vm914_vm7, %v1592_v8, %v911_v20  ;;  %vm1043_vm7 = vcmask 195584   ;;  %v1576_v20 = vld [vmem:[%s2011_s28] ss:$0 sm:$0xff] }
 0x329   : > { %1595 = vrcp.f32 %v872_v25  ;;  %v920_v29 = vsel %vm917_vm9, %v919_v23, %v915_v26  ;;  %v904_v43 = vand.u32 2147483648, %v872_v25  ;;  %vm898_vm13 = vweird.f32 %v872_v25 }
 0x32a   : > { %v929_v28 = vsel %vm928_vm10, %v1594_v11, %v925_v24  ;;  %v937_v31 = vmul.f32 %v1866_v55, %v920_v29  ;;  %v902_v45 = vand.u32 2147483647, %v872_v25  ;;  %v1518_v11 = vld [vmem:[%s1786_s12 + $0x8] sm:$0xff]  ;;  %v1653_v26 = vmov 32.0  }
 0x32b   : > { %v934_v30 = vsel %vm931_vm11, %v933_v27, %v929_v28  ;;  %v905_v47 = vor.u32 1.1754944e-38, %v904_v43  ;;  %vm1197_vm11 = vcmask 523264  }
 0x32c   : > { %v938_v32 = vmul.f32 %v1586_v57, %v934_v30  ;;  %v941_v34 = vpack.c.bf16 %v937_v31, %v937_v31  ;;  %vm903_vm15 = vcmp.eq.f32.partialorder %v902_v45, 8.507059e+37 }
 0x32d   : > { %v1008_v33 = vpop.permute.xlu0 %1007 }
 0x32e   : > { %v1013_v35 = vsel %vm948_vm3, %v1008_v33, 0  ;;  %1472 = vmatmul.msk.bf16.vlgmr.msrb.gmra.mxu3 %vm751_vm2, %v941_v34  ;;  %v942_v38 = vpack.c.bf16 %v938_v32, %v938_v32 }
 0x32f   : > { %v1596_v36 = vpop.eup %1595  ;;  %1022 = vmatpush.bf16.msra.mxu0 %v1013_v35 }
 0x330   : > { %v894_v37 = vmul.f32 %v1596_v36, %v872_v25  ;;  %vm899_vm12 = vweird.f32 %v1596_v36 }
 0x331   : > { %vm900_vm14 = vmor %vm898_vm13, %vm899_vm12 }
 0x332   : > { %v895_v39 = vsub.f32 1.0, %v894_v37  ;;  %1473 = vmatmul.msk.bf16.vlgmr.msra.gmra.mxu0 %vm751_vm2, %v942_v38  ;;  %v1520_v37 = vld [vmem:[%s1803_s17 + $0x8] sm:$0xff]  ;;  %v1519_v38 = vld [vmem:[%s1803_s17] sm:$0xff] }
 0x334   : > { %v896_v40 = vmul.f32 %v1596_v36, %v895_v39  ;;  %v1524_v39 = vld [vmem:[%s1817_s0 + $0x18] sm:$0xff] }
 0x335   : > { %v944_v41 = vpop.permute.xlu0 %943  ;;  %1205 = vmatpush.bf16.msra.mxu3 %v1524_v39 }
 0x336   : > { %v897_v42 = vadd.f32 %v1596_v36, %v896_v40  ;;  %v950_v44 = vsel %vm948_vm3, %v944_v41, 0 }
 0x337   : > { %959 = vmatpush.bf16.msrb.mxu1 %v950_v44 }
 0x338   : > { %v901_v46 = vsel %vm900_vm14, %v1596_v36, %v897_v42  ;;  %v1523_v42 = vld [vmem:[%s1817_s0 + $0x10] sm:$0xff] }
 0x339   : > { %v906_v48 = vsel %vm903_vm15, %v905_v47, %v901_v46  ;;  %1206 = vmatpush.bf16.msra.mxu3 %v1523_v42 }
 0x33a   : > { %v936_v49 = vmul.f32 %v1871_v62, %v906_v48 }
 0x33b   : > { %1075 = vmatpush.bf16.msra.mxu1 %v1518_v11 }
 0x33c   : > { %v940_v52 = vpack.c.bf16 %v936_v49, %v936_v49 }
 0x33f   : > { %1076 = vmatpush.bf16.msra.mxu1 %v1517_v12 }
 0x340   : > { %v966_v50 = vpop.permute.xlu1 %965 }
 0x341   : > { %v971_v51 = vsel %vm948_vm3, %v966_v50, 0  ;;  %vm1041_vm3 = vcmask 130048   ;;  %v1577_v50 = vld [vmem:[%s2012_s15] ss:$0 sm:$0xff] }
 0x342   : > { %980 = vmatpush.bf16.msrb.mxu2 %v971_v51 }
 0x345   : > { %1471 = vmatmul.msk.bf16.vlgmr.msrb.gmra.mxu2 %vm751_vm2, %v940_v52  ;;  %v1578_v52 = vld [vmem:[%s2014_s3] ss:$0 sm:$0xff] }
 0x346   : > { %1152 = vmatpush.bf16.msra.mxu2 %v1520_v37 }
 0x34a   : > { %1153 = vmatpush.bf16.msra.mxu2 %v1519_v38 }
 0x36b   : > { %v869_v53 = vpop.xlane.xlu1 %868 }
 0x36c   : > { %1597 = vrcp.f32 %v869_v53  ;;  %v890_v57 = vand.u32 2147483648, %v869_v53  ;;  %v888_v59 = vand.u32 2147483647, %v869_v53  ;;  %vm884_vm4 = vweird.f32 %v869_v53 }
 0x36d   : > { %1599 = vrcp.f32 %v1653_v26 }
 0x36e   : > { %v891_v61 = vor.u32 1.1754944e-38, %v890_v57  ;;  %vm889_vm6 = vcmp.eq.f32.partialorder %v888_v59, 8.507059e+37  ;;  %v1522_v57 = vld [vmem:[%s1817_s0 + $0x8] sm:$0xff]  ;;  %v1579_v59 = vld [vmem:[%s2016_s29] ss:$0 sm:$0xff] }
 0x36f   : > { %1207 = vmatpush.bf16.msra.mxu3 %v1522_v57 }
 0x372   : > { %v1598_v54 = vpop.eup %1597 }
 0x373   : > { %v880_v55 = vmul.f32 %v1598_v54, %v869_v53  ;;  %vm885_vm0 = vweird.f32 %v1598_v54  ;;  %v1600_v27 = vpop.eup %1599 }
 0x374   : > { %vm886_vm5 = vmor %vm884_vm4, %vm885_vm0  ;;  %v1089_v28 = vmul.f32 32.0, %v1600_v27 }
 0x375   : > { %v881_v56 = vsub.f32 1.0, %v880_v55 }
 0x376   : > { %v1090_v29 = vsub.f32 1.0, %v1089_v28 }
 0x377   : > { %v882_v58 = vmul.f32 %v1598_v54, %v881_v56 }
 0x378   : > { %v1091_v30 = vmul.f32 %v1600_v27, %v1090_v29 }
 0x379   : > { %v883_v60 = vadd.f32 %v1598_v54, %v882_v58  ;;  %v1521_v58 = vld [vmem:[%s1817_s0] sm:$0xff] }
 0x37a   : > { %v1092_v31 = vadd.f32 %v1600_v27, %v1091_v30  ;;  %1208 = vmatpush.bf16.msra.mxu3 %v1521_v58 }
 0x37b   : > { %v887_v62 = vsel %vm886_vm5, %v1598_v54, %v883_v60 }
 0x37c   : > { %v892_v63 = vsel %vm889_vm6, %v891_v61, %v887_v62 }
 0x37d   : > { %v935_v0 = vmul.f32 %v1878_v4, %v892_v63 }
 0x37f   : > { %v939_v1 = vpack.c.bf16 %v935_v0, %v935_v0 }
 0x381   : > { %1470 = vmatmul.msk.bf16.vlgmr.msrb.gmra.mxu1 %vm751_vm2, %v939_v1  ;;  %v1580_v1 = vld [vmem:[%s670_s24] ss:$0 sm:$0xff] }
 0x3af   : > { %v1024_v2 = vpop.f32.mrf.mxu0 }
 0x3b1   : > { %v1003_v5 = vpop.f32.mrf.mxu3 }
 0x3b2   : > { %1033 = vrot.lane.b32.xlu0 %v1003_v5, %s1650_s23 }
 0x3b7   : > { %v1026_v6 = vpop.f32.mrf.mxu0 }
 0x3b9   : > { %v1005_v7 = vpop.f32.mrf.mxu3 }
 0x3c8   : > { %v982_v8 = vpop.f32.mrf.mxu2 }
 0x3c9   : > { %1029 = vrot.lane.b32.xlu2 %v982_v8, %s1651_s25 }
 0x3d0   : > { %v984_v9 = vpop.f32.mrf.mxu2 }
 0x3d1   : > { %1037 = vrot.lane.b32.xlu2 %v1024_v2, %s1652_s26 }
 0x3fe   : > { %v961_v10 = vpop.f32.mrf.mxu1 }
 0x406   : > { %v963_v4 = vpop.f32.mrf.mxu1 }
 0x423   : > { %v1030_v13 = vpop.permute.xlu2 %1029 }
 0x424   : > { %v1040_v14 = vsel %vm751_vm2, %v961_v10, %v1030_v13  ;;  %v1034_v15 = vpop.permute.xlu0 %1033  ;;  %vm1093_vm2 = vweird.f32 %v1600_v27 }
 0x425   : > { %v1042_v16 = vsel %vm1041_vm3, %v1040_v14, %v1034_v15  ;;  %v1094_v32 = vsel %vm1093_vm2, %v1600_v27, %v1092_v31 }
 0x42b   : > { %v1038_v17 = vpop.permute.xlu2 %1037 }
 0x42c   : > { %v1044_v18 = vsel %vm1043_vm7, %v1042_v16, %v1038_v17 }
 0x42d   : > { %v1045_v19 = vpack.c.bf16 %v1044_v18, %v1044_v18 }
 0x42f   : > { %1482 = vmatmul.msk.bf16.vlgmr.msra.gmra.mxu1 %vm711_vm1, %v1045_v19 }
 0x4ac   : > { %v1078_v21 = vpop.f32.mrf.mxu1 }
 0x4ad   : > { %v1079_v22 = vadd.f32 %v1576_v20, %v1078_v21 }
 0x4af   : > { %v1082_v23 = vadd.f32 %v1079_v22, %v1835_v3  ;;  %v1581_v22 = vld [vmem:[%s673_s2] ss:$0 sm:$0xff] }
 0x4b1   : > { %v1085_v24 = vsel %vm711_vm1, %v1082_v23, 0.0 }
 0x4b2   : > { %1086 = vadd.xlane.f32.xlu0 %v1085_v24  ;;  %v1582_v24 = vld [vmem:[%s676_s7] ss:$0 sm:$0xff] }
 0x4b4   : > { %v1080_v25 = vpop.f32.mrf.mxu1 }
 0x525   : > { %v1087_v33 = vpop.xlane.xlu0 %1086 }
 0x526   : > { %v1095_v34 = vmul.f32 %v1094_v32, %v1087_v33 }
 0x528   : > { %v1096_v3 = vsub.f32 %v1082_v23, %v1095_v34 }
 0x52a   : > { %v1097_v35 = vmul.f32 %v1096_v3, %v1096_v3 }
 0x52c   : > { %v1098_v36 = vsel %vm711_vm1, %v1097_v35, 0.0 }
 0x52d   : > { %1099 = vadd.xlane.f32.xlu2 %v1098_v36 }
 0x5a0   : > { %v1100_v40 = vpop.xlane.xlu2 %1099 }
 0x5a1   : > { %v1101_v41 = vmul.f32 %v1100_v40, %v1094_v32 }
 0x5a3   : > { %v1102_v43 = vadd.f32 1e-05, %v1101_v41 }
 0x5a5   : > { %1601 = vrsqrt.f32 %v1102_v43  ;;  %vm1109_vm9 = vweird.f32 %v1102_v43 }
 0x5ab   : > { %v1602_v44 = vpop.eup %1601 }
 0x5ac   : > { %v1104_v45 = vmul.f32 %v1602_v44, %v1102_v43  ;;  %vm1110_vm8 = vweird.f32 %v1602_v44 }
 0x5ad   : > { %vm1111_vm10 = vmor %vm1109_vm9, %vm1110_vm8 }
 0x5ae   : > { %v1105_v46 = vmul.f32 %v1602_v44, %v1104_v45 }
 0x5b0   : > { %v1106_v47 = vmul.f32 0.5, %v1105_v46 }
 0x5b2   : > { %v1107_v48 = vsub.f32 1.5, %v1106_v47 }
 0x5b4   : > { %v1108_v49 = vmul.f32 %v1602_v44, %v1107_v48 }
 0x5b6   : > { %v1112_v51 = vsel %vm1111_vm10, %v1602_v44, %v1108_v49 }
 0x5b7   : > { %v1113_v53 = vmul.f32 %v1112_v51, %v1096_v3 }
 0x5b9   : > { %v1117_v54 = vmul.f32 %v1577_v50, %v1113_v53 }
 0x5bb   : > { %v1121_v55 = vadd.f32 %v1578_v52, %v1117_v54 }
 0x5bd   : > { %v1122_v56 = vpack.c.bf16 %v1121_v55, %v1121_v55 }
 0x5bf   : > { %1491 = vmatmul.msk.bf16.vlgmr.msra.gmra.mxu2 %vm711_vm1, %v1122_v56 }
 0x642   : > { %v1155_v60 = vpop.f32.mrf.mxu2 }
 0x643   : > { %v1156_v61 = vadd.f32 %v1579_v59, %v1155_v60 }
 0x645   : > { %v1159_v62 = vmax.f32 %v1156_v61, 0.0 }
 0x647   : > { %v1160_v63 = vpack.c.bf16 %v1159_v62, %v1159_v62 }
 0x649   : > { %1508 = vmatmul.msk.bf16.vlgmr.msra.gmra.mxu3 %vm1197_vm11, %v1160_v63 }
 0x64a   : > { %v1157_v0 = vpop.f32.mrf.mxu2 }
 0x6cc   : > { %v1210_v2 = vpop.f32.mrf.mxu3 }
 0x6cd   : > { %v1211_v5 = vadd.f32 %v1580_v1, %v1210_v2 }
 0x6cf   : > { %v1214_v6 = vadd.f32 %v1211_v5, %v1121_v55 }
 0x6d1   : > { %v1217_v7 = vsel %vm711_vm1, %v1214_v6, 0.0 }
 0x6d2   : > { %1218 = vadd.xlane.f32.xlu1 %v1217_v7 }
 0x6d4   : > { %v1212_v8 = vpop.f32.mrf.mxu3 }
 0x745   : > { %v1219_v9 = vpop.xlane.xlu1 %1218 }
 0x746   : > { %v1220_v10 = vmul.f32 %v1219_v9, %v1094_v32 }
 0x748   : > { %v1221_v4 = vsub.f32 %v1214_v6, %v1220_v10 }
 0x74a   : > { %v1222_v11 = vmul.f32 %v1221_v4, %v1221_v4 }
 0x74c   : > { %v1223_v12 = vsel %vm711_vm1, %v1222_v11, 0.0 }
 0x74d   : > { %1224 = vadd.xlane.f32.xlu1 %v1223_v12 }
 0x7c0   : > { %v1225_v13 = vpop.xlane.xlu1 %1224 }
 0x7c1   : > { %v1226_v14 = vmul.f32 %v1225_v13, %v1094_v32 }
 0x7c3   : > { %v1227_v15 = vadd.f32 1e-05, %v1226_v14 }
 0x7c5   : > { %1603 = vrsqrt.f32 %v1227_v15  ;;  %vm1234_vm13 = vweird.f32 %v1227_v15 }
 0x7cb   : > { %v1604_v16 = vpop.eup %1603 }
 0x7cc   : > { %v1229_v17 = vmul.f32 %v1604_v16, %v1227_v15  ;;  %vm1235_vm12 = vweird.f32 %v1604_v16 }
 0x7cd   : > { %vm1236_vm14 = vmor %vm1234_vm13, %vm1235_vm12 }
 0x7ce   : > { %v1230_v18 = vmul.f32 %v1604_v16, %v1229_v17 }
 0x7d0   : > { %v1231_v19 = vmul.f32 0.5, %v1230_v18 }
 0x7d2   : > { %v1232_v20 = vsub.f32 1.5, %v1231_v19 }
 0x7d4   : > { %v1233_v21 = vmul.f32 %v1604_v16, %v1232_v20 }
 0x7d6   : > { %v1237_v23 = vsel %vm1236_vm14, %v1604_v16, %v1233_v21 }
 0x7d7   : > { %v1238_v25 = vmul.f32 %v1237_v23, %v1221_v4 }
 0x7d9   : > { %v1242_v26 = vmul.f32 %v1581_v22, %v1238_v25 }
 0x7db   : > { %v1246_v27 = vadd.f32 %v1582_v24, %v1242_v26 }
 0x7dd   : > { %1247 = vst.msk [vmem:[%s1830_s9] sm:$0xff] %vm711_vm1, %v1246_v27 }
 0x7de PF: > { %s2019_s26 = sld [smem:[#allocation5_spill]] }
 0x7df   : > { %s2020_s29 = sld [smem:[#allocation3_spill]] }
 0x7e0   : > { %s2021_s30 = sld [smem:[#allocation4_spill]] }
 0x7e1   : > { %s2022_s15 = sld [smem:[#allocation6_spill]] }
 0x7e2   : > { %s2023_s16 = sld [smem:[#allocation7_spill]] }
 0x7e4   : > { %s24_s17 = sadd.s32 1, %s2019_s26  }
 0x7e5   : > { %p21_p8 = scmp.ge.s32.totalorder %s24_s17, 6  }
 0x7e7   :  { %23 = sbr.rel (!%p21_p8) target bundleno = 12 (0xc), region = 149 }

</bundles_post_ra>
